<compile_context>
chip_gen: v7x
topology: tpu7x:2x2x1
jax: 0.10.0
libtpu: 0.0.40
codegen_flags: <defaults>
</compile_context>

<pallas_src>
import functools

import jax
import jax.numpy as jnp
from jax.experimental import pallas as pl
from jax.experimental.pallas import tpu as pltpu


# ---------------------------------------------------------------------------
# Kernel
# ---------------------------------------------------------------------------
def _ce_acc_kernel(logits_ref, labels_ref, out_ref, *, n_rows):
    """One row-tile of flattened logits.

    logits_ref: (TILE_N, C)  native dtype (f32/bf16), cast to f32 in VMEM.
    labels_ref: (TILE_N, 1)  int32 target class per row.
    out_ref:    (1, 8, 128)  f32; [0, 0, 0] = partial NLL sum,
                                  [0, 0, 1] = partial correct count,
                                  rest zero (lane-dense writeback).
    Rows whose global index >= n_rows (padding of the last partial tile) are
    masked out with selects, so garbage in the padded region cannot leak.
    """
    tile_idx = pl.program_id(0)

    logits = logits_ref[...].astype(jnp.float32)            # (tn, c)
    labels = labels_ref[...]                                 # (tn, 1) int32
    tn, c = logits.shape

    row_in_tile = jax.lax.broadcasted_iota(jnp.int32, (tn, 1), 0)
    valid = (tile_idx * tn + row_in_tile) < n_rows           # (tn, 1) bool

    # (1, C) lane iota; the `== labels` compare broadcasts to (tn, C) without
    # ever materializing a full-tile int32 iota.
    class_ids = jax.lax.broadcasted_iota(jnp.int32, (1, c), 1)

    # Numerically stable log-sum-exp per row.
    row_max = jnp.max(logits, axis=-1, keepdims=True)                      # (tn, 1)
    lse = row_max + jnp.log(jnp.sum(jnp.exp(logits - row_max),
                                    axis=-1, keepdims=True))               # (tn, 1)

    # Gather the logit at the target class via one-hot select.
    onehot = class_ids == labels                                           # (tn, c)
    tgt_logit = jnp.sum(jnp.where(onehot, logits, 0.0),
                        axis=-1, keepdims=True)                            # (tn, 1)

    nll = lse - tgt_logit                                                  # (tn, 1)
    loss_sum = jnp.sum(jnp.where(valid, nll, 0.0))

    # Top-1 correctness: the target logit attains the row maximum.  Reuses
    # row_max / tgt_logit (no extra (tn, c) XLU reduce); exact float ties
    # count as correct, which is measure-zero for float logits.
    correct_sum = jnp.sum(jnp.where(valid & (tgt_logit >= row_max), 1.0, 0.0))

    # Lane-dense single-vreg writeback of the two partial scalars.
    sub = jax.lax.broadcasted_iota(jnp.int32, out_ref.shape, 1)
    lane = jax.lax.broadcasted_iota(jnp.int32, out_ref.shape, 2)
    out_ref[...] = jnp.where((sub == 0) & (lane == 0), loss_sum,
                             jnp.where((sub == 0) & (lane == 1),
                                       correct_sum, 0.0))


# ---------------------------------------------------------------------------
# Wrapper
# ---------------------------------------------------------------------------
_MIN_TILE_ROWS = 512
_MAX_TILE_ROWS = 4096


def _select_tile(n):
    """Row-tile size.

    n <= 512           -> one full-array block (no (8,128) constraint applies).
    512 < n            -> clamp(round_up(cdiv(n, 2), 8), 512, 4096): tiles big
                          enough to amortize the ~0.35us per-grid-step overhead
                          while keeping >= 2 tiles so v7x's two TensorCores can
                          split the "parallel" axis; tiles are multiples of 8
                          and the last partial tile is masked in-kernel.
    """
    if n <= _MIN_TILE_ROWS:
        return n
    half = pl.cdiv(n, 2)
    tile = ((half + 7) // 8) * 8
    return max(_MIN_TILE_ROWS, min(tile, _MAX_TILE_ROWS))


def ce_and_accuracy_sums(logits_flat, labels_flat):
    """logits_flat: (N, C) any float dtype, labels_flat: (N,) int.

    Returns (loss_sum, correct_sum) = (sum of per-row NLL, number of rows whose
    top-1 prediction equals the label), both f32 scalars.
    """
    n, c = logits_flat.shape
    labels2d = labels_flat.reshape(n, 1).astype(jnp.int32)

    tile = _select_tile(n)
    num_tiles = pl.cdiv(n, tile)

    kernel = functools.partial(_ce_acc_kernel, n_rows=n)
    cost = pl.CostEstimate(
        flops=6 * n * c,
        transcendentals=n * c,
        bytes_accessed=(n * c * logits_flat.dtype.itemsize   # logits in
                        + n * 4                               # labels in
                        + num_tiles * 8 * 128 * 4),           # partials out
    )

    partials = pl.pallas_call(
        kernel,
        grid=(num_tiles,),
        in_specs=[
            pl.BlockSpec((tile, c), lambda i: (i, 0)),
            pl.BlockSpec((tile, 1), lambda i: (i, 0)),
        ],
        out_specs=pl.BlockSpec((1, 8, 128), lambda i: (i, 0, 0)),
        out_shape=jax.ShapeDtypeStruct((num_tiles, 8, 128), jnp.float32),
        compiler_params=pltpu.CompilerParams(
            dimension_semantics=("parallel",)),
        cost_estimate=cost,
    )(logits_flat, labels2d)           # native dtype in; cast happens in-kernel

    # Tiny (num_tiles,)-length fold; fuses into the surrounding jit.
    loss_sum = jnp.sum(partials[:, 0, 0])
    correct_sum = jnp.sum(partials[:, 0, 1])
    return loss_sum, correct_sum


@jax.jit
def _labels_loss_and_error(pred_logits, target_classes):
    """Jitted end-to-end labels loss: (B,Q,C) logits + (B,Q) labels ->
    (loss_ce, class_error).  Keeps the reshape, the pallas_call, the cross-tile
    fold and the scalar arithmetic inside a single compiled program."""
    B, Q, C = pred_logits.shape
    n = B * Q
    loss_sum, correct_sum = ce_and_accuracy_sums(
        pred_logits.reshape(n, C), target_classes.reshape(n))
    loss_ce = loss_sum / n
    class_error = 100.0 - correct_sum * (100.0 / n)
    return loss_ce, class_error


# ---------------------------------------------------------------------------
# SetCriterion port
# ---------------------------------------------------------------------------
class SetCriterion:
    """JAX/Pallas port of the DETR-CLA SetCriterion forward pass."""

    def __init__(self, num_queries, num_classes, losses):
        self.num_queries = num_queries
        self.num_classes = num_classes
        self.losses = losses

    # ----- loss pieces -----------------------------------------------------
    def loss_labels(self, outputs, targets, indices, num_preds, log=True):
        assert 'pred_logits' in outputs
        src_logits = outputs['pred_logits']                 # (B, Q, C)
        B, Q, C = src_logits.shape

        # Under the identity matching built in forward() (src_idx == tgt_idx ==
        # arange(Q)), the scatter `target_classes[idx] = target_classes_o`
        # collapses to stacking the first Q labels of each target -- no XLA
        # scatter, no (B, Q) HBM round trip.
        # TODO(synk): general (Hungarian) indices would need a scalar-prefetch
        # path; the reference module's forward() only ever builds identity.
        target_classes = jnp.stack(
            [jnp.asarray(t['labels'])[:Q] for t in targets]).astype(jnp.int32)

        # Single fused, jitted path: CE numerator + top-1 correct count in one
        # kernel pass, fold + scalar math fused around it.
        loss_ce, class_error = _labels_loss_and_error(src_logits, target_classes)

        # F.cross_entropy(..., reduction='mean') over B*Q rows.
        losses = {'loss_ce': loss_ce}
        if log:
            # accuracy(src_logits[idx], target_classes_o): under identity
            # matching this is exactly the data the kernel just processed.
            losses['class_error'] = class_error
        return losses

    def get_loss(self, loss, outputs, targets, indices, num_preds, **kwargs):
        loss_map = {'labels': self.loss_labels}
        assert loss in loss_map, f'do you really want to compute {loss} loss?'
        return loss_map[loss](outputs, targets, indices, num_preds, **kwargs)

    # ----- forward ---------------------------------------------------------
    def forward(self, outputs, targets):
        batch_size = len(targets)
        idx1 = jnp.arange(self.num_queries, dtype=jnp.int32)
        idx2 = jnp.arange(self.num_queries, dtype=jnp.int32)
        indices = [(idx1, idx2) for _ in range(batch_size)]

        num_preds = sum(int(t['labels'].shape[0]) for t in targets)
        num_preds = max(float(num_preds), 1.0)
        # TODO(synk): torch.distributed.all_reduce of num_preds has no
        # single-host equivalent here; num_preds is unused by the labels loss.

        losses = {}
        for loss in self.losses:
            losses.update(self.get_loss(loss, outputs, targets, indices, num_preds))
        return losses


# ---------------------------------------------------------------------------
# Pure-jnp reference for validation
# ---------------------------------------------------------------------------
def _reference_losses(outputs, targets, num_queries):
    logits = outputs['pred_logits']            # (B, Q, C)
    B, Q, C = logits.shape
    labels = jnp.stack([t['labels'][:num_queries] for t in targets]).astype(jnp.int32)
    flat_logits = logits.reshape(B * Q, C).astype(jnp.float32)
    flat_labels = labels.reshape(B * Q)
    logp = jax.nn.log_softmax(flat_logits, axis=-1)
    nll = -jnp.take_along_axis(logp, flat_labels[:, None], axis=-1)[:, 0]
    loss_ce = jnp.mean(nll)
    pred = jnp.argmax(flat_logits, axis=-1)
    acc = jnp.sum((pred == flat_labels).astype(jnp.float32)) * 100.0 / (B * Q)
    return {'loss_ce': loss_ce, 'class_error': 100.0 - acc}


if __name__ == "__main__":
    key = jax.random.PRNGKey(0)
    k1, k2, k3, k4 = jax.random.split(key, 4)

    # --- small config (single full-array block, grid = 1) -------------------
    B, Q, num_classes = 2, 8, 31
    C = num_classes + 1
    pred_logits = jax.random.normal(k1, (B, Q, C), dtype=jnp.float32)
    labels = jax.random.randint(k2, (B, Q), 0, num_classes, dtype=jnp.int32)
    outputs = {'pred_logits': pred_logits}
    targets = [{'labels': labels[b]} for b in range(B)]

    criterion = SetCriterion(num_queries=Q, num_classes=num_classes, losses=['labels'])
    losses = jax.block_until_ready(criterion.forward(outputs, targets))
    ref = _reference_losses(outputs, targets, Q)
    assert abs(float(losses['loss_ce']) - float(ref['loss_ce'])) < 1e-4, \
        (losses['loss_ce'], ref['loss_ce'])
    assert abs(float(losses['class_error']) - float(ref['class_error'])) < 1e-4, \
        (losses['class_error'], ref['class_error'])

    # --- DETR-scale config exercising the tiled / masked path (grid = 2) ----
    B2, Q2, num_classes2 = 2, 300, 91          # N = 600 -> two 512-row tiles
    C2 = num_classes2 + 1
    pred_logits2 = jax.random.normal(k3, (B2, Q2, C2), dtype=jnp.float32)
    labels2 = jax.random.randint(k4, (B2, Q2), 0, num_classes2, dtype=jnp.int32)
    outputs2 = {'pred_logits': pred_logits2}
    targets2 = [{'labels': labels2[b]} for b in range(B2)]

    criterion2 = SetCriterion(num_queries=Q2, num_classes=num_classes2, losses=['labels'])
    losses2 = jax.block_until_ready(criterion2.forward(outputs2, targets2))
    ref2 = _reference_losses(outputs2, targets2, Q2)
    assert abs(float(losses2['loss_ce']) - float(ref2['loss_ce'])) < 1e-3, \
        (losses2['loss_ce'], ref2['loss_ce'])
    assert abs(float(losses2['class_error']) - float(ref2['class_error'])) < 1e-3, \
        (losses2['class_error'], ref2['class_error'])

    print("KERNEL_OK")
</pallas_src>

<mosaic_0001>
module attributes {stable_mosaic.version = 11 : i64} {
  func.func @_ce_acc_kernel(%arg0: i32, %arg1: memref<16x32xf32, #tpu.memory_space<vmem>>, %arg2: memref<16x1xi32, #tpu.memory_space<vmem>>, %arg3: memref<1x8x128xf32, #tpu.memory_space<vmem>>) attributes {dimension_semantics = [#tpu.dimension_semantics<parallel>], iteration_bounds = array<i64: 1>, scalar_prefetch = 0 : i64, scratch_operands = 0 : i64, tpu.core_type = #tpu.core_type<tc>, window_params = [{transform_indices = @transform_0, window_bounds = array<i64: 16, 32>}, {transform_indices = @transform_1, window_bounds = array<i64: 16, 1>}, {transform_indices = @transform_2, window_bounds = array<i64: 1, 8, 128>}]} {
    %c0 = arith.constant 0 : index
    %c0_0 = arith.constant 0 : index
    %0 = vector.load %arg1[%c0, %c0_0] : memref<16x32xf32, #tpu.memory_space<vmem>>, vector<16x32xf32>
    %c0_1 = arith.constant 0 : index
    %c0_2 = arith.constant 0 : index
    %1 = vector.load %arg2[%c0_1, %c0_2] : memref<16x1xi32, #tpu.memory_space<vmem>>, vector<16x1xi32>
    %2 = tpu.iota {dimensions = array<i32: 0>} : vector<16x1xi32>
    %c16_i32 = arith.constant 16 : i32
    %3 = arith.muli %arg0, %c16_i32 : i32
    %4 = vector.broadcast %3 : i32 to vector<16x1xi32>
    %5 = arith.addi %4, %2 : vector<16x1xi32>
    %c16_i32_3 = arith.constant 16 : i32
    %6 = vector.broadcast %c16_i32_3 : i32 to vector<16x1xi32>
    %7 = arith.cmpi slt, %5, %6 : vector<16x1xi32>
    %8 = tpu.iota {dimensions = array<i32: 1>} : vector<1x32xi32>
    %cst = arith.constant dense<0xFF800000> : vector<16xf32>
    %9 = vector.multi_reduction <maximumf>, %0, %cst [1] : vector<16x32xf32> to vector<16xf32>
    %10 = vector.shape_cast %9 : vector<16xf32> to vector<16x1xf32>
    %11 = vector.broadcast %10 : vector<16x1xf32> to vector<16x32xf32>
    %12 = arith.subf %0, %11 : vector<16x32xf32>
    %13 = math.exp %12 : vector<16x32xf32>
    %cst_4 = arith.constant dense<0.000000e+00> : vector<16xf32>
    %14 = vector.multi_reduction <add>, %13, %cst_4 [1] : vector<16x32xf32> to vector<16xf32>
    %15 = vector.shape_cast %14 : vector<16xf32> to vector<16x1xf32>
    %16 = math.log %15 : vector<16x1xf32>
    %17 = arith.addf %10, %16 : vector<16x1xf32>
    %18 = vector.broadcast %8 : vector<1x32xi32> to vector<16x32xi32>
    %19 = vector.broadcast %1 : vector<16x1xi32> to vector<16x32xi32>
    %20 = arith.cmpi eq, %18, %19 : vector<16x32xi32>
    %cst_5 = arith.constant 0.000000e+00 : f32
    %21 = vector.broadcast %cst_5 : f32 to vector<16x32xf32>
    %22 = arith.select %20, %0, %21 : vector<16x32xi1>, vector<16x32xf32>
    %cst_6 = arith.constant dense<0.000000e+00> : vector<16xf32>
    %23 = vector.multi_reduction <add>, %22, %cst_6 [1] : vector<16x32xf32> to vector<16xf32>
    %24 = vector.shape_cast %23 : vector<16xf32> to vector<16x1xf32>
    %25 = arith.subf %17, %24 : vector<16x1xf32>
    %cst_7 = arith.constant 0.000000e+00 : f32
    %26 = vector.broadcast %cst_7 : f32 to vector<16x1xf32>
    %27 = arith.select %7, %25, %26 : vector<16x1xi1>, vector<16x1xf32>
    %28 = vector.shape_cast %27 : vector<16x1xf32> to vector<1x16x1xf32>
    %cst_8 = arith.constant dense<0.000000e+00> : vector<1xf32>
    %29 = vector.multi_reduction <add>, %28, %cst_8 [1, 2] : vector<1x16x1xf32> to vector<1xf32>
    %30 = vector.shape_cast %29 : vector<1xf32> to vector<1x1x1xf32>
    %31 = vector.extract %30[0, 0, 0] : f32 from vector<1x1x1xf32>
    %32 = arith.cmpf oge, %24, %10 : vector<16x1xf32>
    %33 = arith.andi %7, %32 : vector<16x1xi1>
    %cst_9 = arith.constant 1.000000e+00 : f32
    %cst_10 = arith.constant 0.000000e+00 : f32
    %34 = vector.broadcast %cst_9 : f32 to vector<16x1xf32>
    %35 = vector.broadcast %cst_10 : f32 to vector<16x1xf32>
    %36 = arith.select %33, %34, %35 : vector<16x1xi1>, vector<16x1xf32>
    %37 = vector.shape_cast %36 : vector<16x1xf32> to vector<1x16x1xf32>
    %cst_11 = arith.constant dense<0.000000e+00> : vector<1xf32>
    %38 = vector.multi_reduction <add>, %37, %cst_11 [1, 2] : vector<1x16x1xf32> to vector<1xf32>
    %39 = vector.shape_cast %38 : vector<1xf32> to vector<1x1x1xf32>
    %40 = vector.extract %39[0, 0, 0] : f32 from vector<1x1x1xf32>
    %41 = tpu.iota {dimensions = array<i32: 1>} : vector<1x8x128xi32>
    %42 = tpu.iota {dimensions = array<i32: 2>} : vector<1x8x128xi32>
    %c0_i32 = arith.constant 0 : i32
    %43 = vector.broadcast %c0_i32 : i32 to vector<1x8x128xi32>
    %44 = arith.cmpi eq, %41, %43 : vector<1x8x128xi32>
    %c0_i32_12 = arith.constant 0 : i32
    %45 = vector.broadcast %c0_i32_12 : i32 to vector<1x8x128xi32>
    %46 = arith.cmpi eq, %42, %45 : vector<1x8x128xi32>
    %47 = arith.andi %44, %46 : vector<1x8x128xi1>
    %c0_i32_13 = arith.constant 0 : i32
    %48 = vector.broadcast %c0_i32_13 : i32 to vector<1x8x128xi32>
    %49 = arith.cmpi eq, %41, %48 : vector<1x8x128xi32>
    %c1_i32 = arith.constant 1 : i32
    %50 = vector.broadcast %c1_i32 : i32 to vector<1x8x128xi32>
    %51 = arith.cmpi eq, %42, %50 : vector<1x8x128xi32>
    %52 = arith.andi %49, %51 : vector<1x8x128xi1>
    %cst_14 = arith.constant 0.000000e+00 : f32
    %53 = vector.broadcast %40 : f32 to vector<1x8x128xf32>
    %54 = vector.broadcast %cst_14 : f32 to vector<1x8x128xf32>
    %55 = arith.select %52, %53, %54 : vector<1x8x128xi1>, vector<1x8x128xf32>
    %56 = vector.broadcast %31 : f32 to vector<1x8x128xf32>
    %57 = arith.select %47, %56, %55 : vector<1x8x128xi1>, vector<1x8x128xf32>
    %c0_15 = arith.constant 0 : index
    %c0_16 = arith.constant 0 : index
    %c0_17 = arith.constant 0 : index
    %58 = vector.load %arg3[%c0_15, %c0_16, %c0_17] : memref<1x8x128xf32, #tpu.memory_space<vmem>>, vector<1x8x128xf32>
    tpu.vector_store %arg3[%c0_15, %c0_16, %c0_17], %57 {strides = array<i32>} : memref<1x8x128xf32, #tpu.memory_space<vmem>>, vector<1x8x128xf32>,
    return
  }
  func.func @transform_0(%arg0: i32) -> (i32, i32) {
    %c0_i32 = arith.constant 0 : i32
    %c0_i32_0 = arith.constant 0 : i32
    return %arg0, %c0_i32 : i32, i32
  }
  func.func @transform_1(%arg0: i32) -> (i32, i32) {
    %c0_i32 = arith.constant 0 : i32
    %c0_i32_0 = arith.constant 0 : i32
    return %arg0, %c0_i32 : i32, i32
  }
  func.func @transform_2(%arg0: i32) -> (i32, i32, i32) {
    %c0_i32 = arith.constant 0 : i32
    %c0_i32_0 = arith.constant 0 : i32
    %c0_i32_1 = arith.constant 0 : i32
    return %arg0, %c0_i32, %c0_i32_0 : i32, i32, i32
  }
}

</mosaic_0001>

<bundles_post_ra>
// kernel: _labels_loss_and_error.1
= control target key start
LH: loop header
LB: loop body
LE: loop exit
PB: predicated region body
PF: predicated region fallthrough
CT: control target
= control target key end

     0   :  { %vm26_vm0 = vcmask 261120   ;;  %v132_v2 = vmov 0   ;;  %v15_v11 = vlaneseq  ;;  %v133_v37 = vmov 0.0   ;;  %s178_s0 = inlined_call_operand.vmem [shape: f32[16,32], index: 0, kind: input, shape index: {}]   ;;  %s179_s1 = inlined_call_operand.vmem [shape: s32[16,1], index: 1, kind: input, shape index: {}]   ;;  %s180_s2 = inlined_call_operand.vmem [shape: f32[1,8,128], index: 2, kind: output, shape index: {}]  }
   0x1   :  { %v11_v0 = vld [vmem:[%s178_s0] sm:$0xff]  ;;  %v12_v1 = vld [vmem:[%s178_s0 + $0x8] sm:$0xff]  ;;  %122 = vset.pattern.permute.xlu1 %v132_v2  ;;  %123 = vset.pattern.permute.xlu0 %v132_v2  ;;  %vm71_vm5 = vcmask 7168  }
   0x2   :  { %v13_v3 = vld [vmem:[%s179_s1] sm:$0xff]  ;;  %v27_v4 = vsel %vm26_vm0, %v11_v0, -inf  ;;  %v14_v5 = vld [vmem:[%s179_s1 + $0x8] sm:$0xff]  ;;  %v30_v6 = vsel %vm26_vm0, %v12_v1, -inf  ;;  %v164_v15 = vand.u32 127, %v15_v11  ;;  %v16_v60 = vshrl.u32 %v15_v11, 7 }
   0x3   :  { %52 = vperm.xlu1 %122, %v13_v3   ;;  %28 = vmax.xlane.f32.xlu0 %v27_v4 }
   0x4   :  { %vm102_vm6 = vcmp.eq.s32.totalorder %v16_v60, 0  ;;  %vm105_vm7 = vcmp.eq.s32.totalorder %v164_v15, 1  ;;  %vm103_vm8 = vcmp.eq.s32.totalorder %v164_v15, 0 }
   0x5   :  { %vm106_vm9 = vmand %vm102_vm6, %vm105_vm7 }
   0x6   :  { %vm104_vm10 = vmand %vm102_vm6, %vm103_vm8 }
   0x7   :  { %55 = vperm.xlu1 %122, %v14_v5   ;;  %31 = vmax.xlane.f32.xlu0 %v30_v6 }
  0x82   :  { %v53_v14 = vpop.permute.xlu1 %52 }
  0x83   :  { %vm57_vm1 = vcmp.eq.s32.totalorder %v164_v15, %v53_v14 }
  0x84   :  { %v59_v18 = vsel %vm57_vm1, %v11_v0, 0.0 }
  0x85   :  { %v61_v20 = vsel %vm26_vm0, %v59_v18, 0.0 }
  0x86   :  { %v56_v16 = vpop.permute.xlu1 %55 }
  0x87   :  { %vm58_vm2 = vcmp.eq.s32.totalorder %v164_v15, %v56_v16 }
  0x88   :  { %v60_v22 = vsel %vm58_vm2, %v12_v1, 0.0 }
  0x89   :  { %v64_v24 = vsel %vm26_vm0, %v60_v22, 0.0 }
  0x90   :  { %v29_v7 = vpop.xlane.xlu0 %28 }
  0x91   :  { %v33_v8 = vsub.f32 %v11_v0, %v29_v7 }
  0x93   :  { %v35_v9 = vmul.f32 1.442695, %v33_v8 }
  0x94   :  { %v32_v10 = vpop.xlane.xlu0 %31 }
  0x95   :  { %124 = vpow2.f32 %v35_v9  ;;  %v34_v12 = vsub.f32 %v12_v1, %v32_v10 }
  0x97   :  { %v37_v13 = vmul.f32 1.442695, %v34_v12 }
  0x99   :  { %126 = vpow2.f32 %v37_v13 }
  0x9f   :  { %v125_v17 = vpop.eup %124 }
  0xa0   :  { %v39_v19 = vsel %vm26_vm0, %v125_v17, 0.0 }
  0xa1   :  { %40 = vadd.xlane.f32.xlu0 %v39_v19 }
  0xa3   :  { %v127_v21 = vpop.eup %126 }
  0xa4   :  { %v42_v23 = vsel %vm26_vm0, %v127_v21, 0.0 }
  0xa5   :  { %62 = vadd.xlane.f32.xlu0 %v61_v20  ;;  %43 = vadd.xlane.f32.xlu1 %v42_v23 }
  0xa9   :  { %65 = vadd.xlane.f32.xlu0 %v64_v24 }
 0x12e   :  { %v41_v25 = vpop.xlane.xlu0 %40 }
 0x12f   :  { %128 = vlog2.f32 %v41_v25 }
 0x132   :  { %v44_v26 = vpop.xlane.xlu1 %43  ;;  %v63_v27 = vpop.xlane.xlu0 %62 }
 0x133   :  { %130 = vlog2.f32 %v44_v26  ;;  %vm84_vm4 = vcmp.ge.f32.partialorder %v63_v27, %v29_v7 }
 0x134   :  { %v88_v41 = vsel %vm84_vm4, 1.0, %v133_v37 }
 0x135   :  { %v90_v44 = vsel %vm71_vm5, %v88_v41, 0.0 }
 0x136   :  { %v66_v32 = vpop.xlane.xlu0 %65 }
 0x137   :  { %vm85_vm3 = vcmp.ge.f32.partialorder %v66_v32, %v32_v10 }
 0x138   :  { %v89_v38 = vsel %vm85_vm3, 1.0, %v133_v37 }
 0x139   :  { %v129_v28 = vpop.eup %128  ;;  %v91_v43 = vsel %vm71_vm5, %v89_v38, 0.0 }
 0x13a   :  { %v46_v29 = vmul.f32 0.6931472, %v129_v28  ;;  %v92_v45 = vadd.f32 %v91_v43, %v90_v44 }
 0x13c   :  { %v49_v30 = vadd.f32 %v46_v29, %v29_v7 }
 0x13d   :  { %v131_v31 = vpop.eup %130 }
 0x13e   :  { %v48_v33 = vmul.f32 0.6931472, %v131_v31  ;;  %v67_v34 = vsub.f32 %v49_v30, %v63_v27 }
 0x140   :  { %v50_v35 = vadd.f32 %v48_v33, %v32_v10  ;;  %v72_v39 = vsel %vm71_vm5, %v67_v34, 0.0 }
 0x142   :  { %v68_v36 = vsub.f32 %v50_v35, %v66_v32 }
 0x144   :  { %v73_v40 = vsel %vm71_vm5, %v68_v36, 0.0 }
 0x145   :  { %v74_v42 = vadd.f32 %v73_v40, %v72_v39 }
 0x147   :  { %75 = vadd.xlane.f32.xlu0 %v74_v42 }
 0x14b   :  { %93 = vadd.xlane.f32.xlu0 %v92_v45 }
 0x1d4   :  { %v76_v46 = vpop.xlane.xlu0 %75 }
 0x1d5   :  { %v77_v47 = vrot.slane %v76_v46, 4 }
 0x1d7   :  { %v78_v48 = vadd.f32 %v77_v47, %v76_v46 }
 0x1d8   :  { %v94_v49 = vpop.xlane.xlu0 %93 }
 0x1d9   :  { %v79_v50 = vrot.slane %v78_v48, 2  ;;  %v95_v51 = vrot.slane %v94_v49, 4 }
 0x1db   :  { %v96_v52 = vadd.f32 %v95_v51, %v94_v49  ;;  %v80_v53 = vadd.f32 %v79_v50, %v78_v48 }
 0x1dd   :  { %v97_v54 = vrot.slane %v96_v52, 2  ;;  %v81_v55 = vrot.slane %v80_v53, 1 }
 0x1df   :  { %v98_v56 = vadd.f32 %v97_v54, %v96_v52  ;;  %v82_v57 = vadd.f32 %v81_v55, %v80_v53 }
 0x1e1   :  { %116 = vpush %v82_v57  ;;  %v99_v58 = vrot.slane %v98_v56, 1 }
 0x1e3   :  { %v100_v59 = vadd.f32 %v99_v58, %v98_v56 }
 0x1e5   :  { %118 = vpush %v100_v59 }
 0x212   :  { %s117_s0 = spop %116 }
 0x213   :  { %v109_v62 = vstv %s117_s0 }
 0x216   :  { %s119_s1 = spop %118 }
 0x217   :  { %v107_v61 = vstv %s119_s1 }
 0x218   :  { %v108_v63 = vsel %vm106_vm9, %v107_v61, 0.0 }
 0x219   :  { %v110_v0 = vsel %vm104_vm10, %v109_v62, %v108_v63 }
 0x21a   :  { %111 = vst [vmem:[%s180_s2] sm:$0xff] %v110_v0 }

</bundles_post_ra>
